<compile_context>
chip_gen: v7x
topology: tpu7x:2x2x1
jax: 0.10.0
libtpu: 0.0.40
codegen_flags: <defaults>
</compile_context>

<pallas_src>
import functools
import math

import jax
import jax.numpy as jnp
from jax import lax
from jax.experimental import pallas as pl
from jax.experimental.pallas import tpu as pltpu


def _round_up(x, m):
    return ((x + m - 1) // m) * m


def _vmem_limit_bytes():
    """Generation-aware VMEM budget: ~3/4 of physical, clipped to [32, 100] MiB."""
    mib = 1024 * 1024
    try:
        cap = int(pltpu.get_tpu_info().vmem_capacity_bytes)
    except Exception:  # unknown part / emulator — use a conservative default
        cap = 64 * mib
    return int(max(32 * mib, min(100 * mib, (cap * 3) // 4)))


def _attention_block_kernel(x_ref, wqkv_ref, bqkv_ref, head_bias_ref, wp_ref,
                            bp_ref, o_ref, *, channels, seq_len, matmul_dtype,
                            approx_softmax):
    C = channels
    L = seq_len                       # true (unpadded) length
    Lp = x_ref.shape[-1]              # padded length, multiple of 128

    x = x_ref[0]                      # (C, Lp) f32, lane-dense
    x_mm = x.astype(matmul_dtype)

    wqkv = wqkv_ref[...]              # (3C, C)  matmul dtype (q rows pre-scaled)
    bqkv = bqkv_ref[...]              # (3C, 1)  f32         (q rows pre-scaled)
    head_bias = head_bias_ref[...]    # (C, C)   f32: 0 same-head, -1e30 off-block
    wp = wp_ref[...]                  # (C, C)   matmul dtype
    bp = bp_ref[...]                  # (C, 1)   f32

    # Fused Q/K/V projection: one (3C, C) @ (C, Lp) MXU matmul, N = Lp >= 128.
    qkv = jnp.dot(wqkv, x_mm, preferred_element_type=jnp.float32) + bqkv
    qkv = qkv.astype(matmul_dtype)    # single cast of the whole slab

    # Sublane slices only (C is the full head stack h*D + d) — no relayout.
    q = qkv[0 * C:1 * C]              # (C, Lp), already scaled by 1/sqrt(D)
    k = qkv[1 * C:2 * C]
    v = qkv[2 * C:3 * C]

    if Lp > L:
        # Padded x columns are zero, but the bias add leaks b_k into them;
        # zero K's padded lanes so the L-contraction below stays exact.
        lane_ok = lax.broadcasted_iota(jnp.int32, (1, Lp), 1) < L
        k = k * lane_ok.astype(k.dtype)

    # Scores for ALL heads at once: (C, Lp) x (Lp, C) -> (C, C), K-dim = Lp.
    s = lax.dot_general(q, k, (((1,), (1,)), ((), ())),
                        preferred_element_type=jnp.float32)
    # Block-diagonal mask => softmax over each head's own DxD block only.
    s = s + head_bias

    s = s - jnp.max(s, axis=-1, keepdims=True)
    e = jnp.exp(s)
    denom = jnp.sum(e, axis=-1, keepdims=True)
    attn = e * pl.reciprocal(denom, approx=approx_softmax)    # (C, C)

    # attn is block-diagonal, so a full (C, C) @ (C, Lp) matmul reproduces the
    # per-head attn @ v exactly.
    out = jnp.dot(attn.astype(matmul_dtype), v,
                  preferred_element_type=jnp.float32)         # (C, Lp)

    # Output projection + bias + residual (residual kept in f32).
    y = (jnp.dot(wp, out.astype(matmul_dtype),
                 preferred_element_type=jnp.float32) + bp + x)
    o_ref[0] = y.astype(o_ref.dtype)


def attention_block(x, wq, bq, wk, bk, wv, bv, wp, bp, *, heads,
                    matmul_dtype=jnp.float32, approx_softmax=False,
                    lane_multiple=128):
    """Pallas TPU forward of AttentionBlock. x: (B, C, L) f32."""
    B, C, L = x.shape
    assert C % heads == 0
    head_dim = C // heads
    scale = 1.0 / math.sqrt(head_dim)

    # Lane-dense layout plumbing (wrapper side): pad L up to a multiple of 128
    # (use lane_multiple=256 to fill the v6e/v7x MXU N-dim when L is large).
    Lp = max(_round_up(L, lane_multiple), lane_multiple)
    x_p = jnp.pad(x, ((0, 0), (0, 0), (0, Lp - L))) if Lp != L else x

    # Algebra plumbing done once in the wrapper (not per grid step):
    #  * fuse Wq/Wk/Wv into one (3C, C) weight -> one MXU matmul per step,
    #  * fold the 1/sqrt(head_dim) score scale into the q rows,
    #  * build the block-diagonal additive head mask.
    w_qkv = jnp.concatenate([wq * scale, wk, wv], axis=0).astype(matmul_dtype)
    b_qkv = jnp.concatenate([bq * scale, bk, bv], axis=0).reshape(3 * C, 1)
    b_qkv = b_qkv.astype(jnp.float32)
    wp_c = wp.astype(matmul_dtype)
    bp_c = bp.reshape(C, 1).astype(jnp.float32)

    hid = jnp.arange(C, dtype=jnp.int32) // head_dim
    head_bias = jnp.where(hid[:, None] == hid[None, :],
                          jnp.float32(0.0), jnp.float32(-1e30))

    kernel = functools.partial(
        _attention_block_kernel,
        channels=C, seq_len=L, matmul_dtype=matmul_dtype,
        approx_softmax=approx_softmax)

    out_p = pl.pallas_call(
        kernel,
        out_shape=jax.ShapeDtypeStruct((B, C, Lp), x.dtype),
        grid=(B,),  # one batch element per step; >= 2 steps -> megacore on v7x
        in_specs=[
            pl.BlockSpec((1, C, Lp), lambda b: (b, 0, 0)),   # x (padded)
            pl.BlockSpec((3 * C, C), lambda b: (0, 0)),      # fused W_qkv
            pl.BlockSpec((3 * C, 1), lambda b: (0, 0)),      # fused b_qkv
            pl.BlockSpec((C, C), lambda b: (0, 0)),          # head block mask
            pl.BlockSpec((C, C), lambda b: (0, 0)),          # W_proj
            pl.BlockSpec((C, 1), lambda b: (0, 0)),          # b_proj
        ],
        out_specs=pl.BlockSpec((1, C, Lp), lambda b: (b, 0, 0)),  # lane-dense
        compiler_params=pltpu.CompilerParams(
            dimension_semantics=("parallel",),
            vmem_limit_bytes=_vmem_limit_bytes()),
    )(x_p, w_qkv, b_qkv, head_bias, wp_c, bp_c)

    return out_p[:, :, :L] if Lp != L else out_p


def attention_block_reference(x, wq, bq, wk, bk, wv, bv, wp, bp, *, heads):
    """Pure-JAX reference mirroring the PyTorch forward exactly."""
    B, C, L = x.shape
    D = C // heads

    def conv1x1(w, b, t):
        return jnp.einsum('oc,bcl->bol', w, t) + b[None, :, None]

    q = conv1x1(wq, bq, x).reshape(B, heads, D, L)
    k = conv1x1(wk, bk, x).reshape(B, heads, D, L)
    v = conv1x1(wv, bv, x).reshape(B, heads, D, L)

    scores = jnp.einsum('bhdl,bhel->bhde', q, k) / (D ** 0.5)   # (B,H,D,D)
    attn = jax.nn.softmax(scores, axis=-1)
    out = jnp.einsum('bhde,bhel->bhdl', attn, v).reshape(B, C, L)
    return conv1x1(wp, bp, out) + x


if __name__ == "__main__":
    # Make the f32 reference/kernel comparison use full-precision matmuls.
    jax.config.update("jax_default_matmul_precision", "highest")

    B, C, L, heads = 2, 32, 16, 4

    key = jax.random.PRNGKey(0)
    keys = jax.random.split(key, 9)

    s = 0.1
    wq = s * jax.random.normal(keys[0], (C, C), jnp.float32)
    bq = s * jax.random.normal(keys[1], (C,), jnp.float32)
    wk = s * jax.random.normal(keys[2], (C, C), jnp.float32)
    bk = s * jax.random.normal(keys[3], (C,), jnp.float32)
    wv = s * jax.random.normal(keys[4], (C, C), jnp.float32)
    bv = s * jax.random.normal(keys[5], (C,), jnp.float32)
    wp = s * jax.random.normal(keys[6], (C, C), jnp.float32)
    bp = s * jax.random.normal(keys[7], (C,), jnp.float32)

    x = jax.random.normal(keys[8], (B, C, L), jnp.float32)

    ref = attention_block_reference(x, wq, bq, wk, bk, wv, bv, wp, bp,
                                    heads=heads)

    # Exact path (f32 matmul operands, exact softmax reciprocal).
    out_f32 = attention_block(x, wq, bq, wk, bk, wv, bv, wp, bp, heads=heads,
                              matmul_dtype=jnp.float32, approx_softmax=False)
    out_f32 = jax.block_until_ready(out_f32)
    assert out_f32.shape == (B, C, L)
    assert jnp.allclose(out_f32, ref, atol=5e-3, rtol=5e-3), "f32 mismatch vs reference"

    # Fast path (bf16 MXU operands, approximate reciprocal on the EUP).
    out_bf16 = attention_block(x, wq, bq, wk, bk, wv, bv, wp, bp, heads=heads,
                               matmul_dtype=jnp.bfloat16, approx_softmax=True)
    out_bf16 = jax.block_until_ready(out_bf16)
    assert out_bf16.shape == (B, C, L)
    assert jnp.allclose(out_bf16, ref, atol=6e-2, rtol=6e-2), "bf16 mismatch vs reference"

    print("KERNEL_OK")
</pallas_src>

<mosaic_0001>
module attributes {stable_mosaic.version = 11 : i64} {
  func.func @_attention_block_kernel(%arg0: i32, %arg1: memref<1x32x128xf32, #tpu.memory_space<vmem>>, %arg2: memref<96x32xf32, #tpu.memory_space<vmem>>, %arg3: memref<96x1xf32, #tpu.memory_space<vmem>>, %arg4: memref<32x32xf32, #tpu.memory_space<vmem>>, %arg5: memref<32x32xf32, #tpu.memory_space<vmem>>, %arg6: memref<32x1xf32, #tpu.memory_space<vmem>>, %arg7: memref<1x32x128xf32, #tpu.memory_space<vmem>>) attributes {dimension_semantics = [#tpu.dimension_semantics<parallel>], iteration_bounds = array<i64: 2>, scalar_prefetch = 0 : i64, scratch_operands = 0 : i64, tpu.core_type = #tpu.core_type<tc>, window_params = [{transform_indices = @transform_0, window_bounds = array<i64: 1, 32, 128>}, {pipeline_mode = #tpu.pipeline_mode<synchronous>, transform_indices = @transform_1, window_bounds = array<i64: 96, 32>}, {pipeline_mode = #tpu.pipeline_mode<synchronous>, transform_indices = @transform_2, window_bounds = array<i64: 96, 1>}, {pipeline_mode = #tpu.pipeline_mode<synchronous>, transform_indices = @transform_3, window_bounds = array<i64: 32, 32>}, {pipeline_mode = #tpu.pipeline_mode<synchronous>, transform_indices = @transform_4, window_bounds = array<i64: 32, 32>}, {pipeline_mode = #tpu.pipeline_mode<synchronous>, transform_indices = @transform_5, window_bounds = array<i64: 32, 1>}, {transform_indices = @transform_6, window_bounds = array<i64: 1, 32, 128>}]} {
    %c0 = arith.constant 0 : index
    %c0_0 = arith.constant 0 : index
    %c0_1 = arith.constant 0 : index
    %0 = vector.load %arg1[%c0, %c0_0, %c0_1] : memref<1x32x128xf32, #tpu.memory_space<vmem>>, vector<1x32x128xf32>
    %1 = vector.shape_cast %0 : vector<1x32x128xf32> to vector<32x128xf32>
    %c0_2 = arith.constant 0 : index
    %c0_3 = arith.constant 0 : index
    %2 = vector.load %arg2[%c0_2, %c0_3] : memref<96x32xf32, #tpu.memory_space<vmem>>, vector<96x32xf32>
    %c0_4 = arith.constant 0 : index
    %c0_5 = arith.constant 0 : index
    %3 = vector.load %arg3[%c0_4, %c0_5] : memref<96x1xf32, #tpu.memory_space<vmem>>, vector<96x1xf32>
    %c0_6 = arith.constant 0 : index
    %c0_7 = arith.constant 0 : index
    %4 = vector.load %arg4[%c0_6, %c0_7] : memref<32x32xf32, #tpu.memory_space<vmem>>, vector<32x32xf32>
    %c0_8 = arith.constant 0 : index
    %c0_9 = arith.constant 0 : index
    %5 = vector.load %arg5[%c0_8, %c0_9] : memref<32x32xf32, #tpu.memory_space<vmem>>, vector<32x32xf32>
    %c0_10 = arith.constant 0 : index
    %c0_11 = arith.constant 0 : index
    %6 = vector.load %arg6[%c0_10, %c0_11] : memref<32x1xf32, #tpu.memory_space<vmem>>, vector<32x1xf32>
    %cst = arith.constant dense<0.000000e+00> : vector<96x128xf32>
    %7 = tpu.matmul %2, %1, %cst {dimension_numbers = #tpu.dot_dimension_numbers<[1], [0], [0], [1], [0, 0, 1, 1], [], []>, precision = #tpu.contract_precision<fp32>} : vector<96x32xf32>, vector<32x128xf32>, vector<96x128xf32> -> vector<96x128xf32>
    %8 = vector.broadcast %3 : vector<96x1xf32> to vector<96x128xf32>
    %9 = arith.addf %7, %8 : vector<96x128xf32>
    %10 = vector.extract_strided_slice %9 {offsets = [0, 0], sizes = [32, 128], strides = [1, 1]} : vector<96x128xf32> to vector<32x128xf32>
    %11 = vector.extract_strided_slice %9 {offsets = [32, 0], sizes = [32, 128], strides = [1, 1]} : vector<96x128xf32> to vector<32x128xf32>
    %12 = vector.extract_strided_slice %9 {offsets = [64, 0], sizes = [32, 128], strides = [1, 1]} : vector<96x128xf32> to vector<32x128xf32>
    %13 = tpu.iota {dimensions = array<i32: 1>} : vector<1x128xi32>
    %c16_i32 = arith.constant 16 : i32
    %14 = vector.broadcast %c16_i32 : i32 to vector<1x128xi32>
    %15 = arith.cmpi slt, %13, %14 : vector<1x128xi32>
    %16 = arith.extui %15 : vector<1x128xi1> to vector<1x128xi32>
    %17 = arith.sitofp %16 : vector<1x128xi32> to vector<1x128xf32>
    %18 = vector.broadcast %17 : vector<1x128xf32> to vector<32x128xf32>
    %19 = arith.mulf %11, %18 : vector<32x128xf32>
    %cst_12 = arith.constant dense<0.000000e+00> : vector<32x32xf32>
    %20 = tpu.matmul %10, %19, %cst_12 {dimension_numbers = #tpu.dot_dimension_numbers<[1], [1], [0], [0], [0, 0, 1, 0], [], []>, precision = #tpu.contract_precision<fp32>} : vector<32x128xf32>, vector<32x128xf32>, vector<32x32xf32> -> vector<32x32xf32>
    %21 = arith.addf %20, %4 : vector<32x32xf32>
    %cst_13 = arith.constant dense<0xFF800000> : vector<32xf32>
    %22 = vector.multi_reduction <maximumf>, %21, %cst_13 [1] : vector<32x32xf32> to vector<32xf32>
    %23 = vector.shape_cast %22 : vector<32xf32> to vector<32x1xf32>
    %24 = vector.broadcast %23 : vector<32x1xf32> to vector<32x32xf32>
    %25 = arith.subf %21, %24 : vector<32x32xf32>
    %26 = math.exp %25 : vector<32x32xf32>
    %cst_14 = arith.constant dense<0.000000e+00> : vector<32xf32>
    %27 = vector.multi_reduction <add>, %26, %cst_14 [1] : vector<32x32xf32> to vector<32xf32>
    %28 = vector.shape_cast %27 : vector<32xf32> to vector<32x1xf32>
    %29 = tpu.reciprocal %28 : vector<32x1xf32> -> vector<32x1xf32>
    %30 = vector.broadcast %29 : vector<32x1xf32> to vector<32x32xf32>
    %31 = arith.mulf %26, %30 : vector<32x32xf32>
    %cst_15 = arith.constant dense<0.000000e+00> : vector<32x128xf32>
    %32 = tpu.matmul %31, %12, %cst_15 {dimension_numbers = #tpu.dot_dimension_numbers<[1], [0], [0], [1], [0, 0, 1, 1], [], []>, precision = #tpu.contract_precision<fp32>} : vector<32x32xf32>, vector<32x128xf32>, vector<32x128xf32> -> vector<32x128xf32>
    %cst_16 = arith.constant dense<0.000000e+00> : vector<32x128xf32>
    %33 = tpu.matmul %5, %32, %cst_16 {dimension_numbers = #tpu.dot_dimension_numbers<[1], [0], [0], [1], [0, 0, 1, 1], [], []>, precision = #tpu.contract_precision<fp32>} : vector<32x32xf32>, vector<32x128xf32>, vector<32x128xf32> -> vector<32x128xf32>
    %34 = vector.broadcast %6 : vector<32x1xf32> to vector<32x128xf32>
    %35 = arith.addf %33, %34 : vector<32x128xf32>
    %36 = arith.addf %35, %1 : vector<32x128xf32>
    %c0_17 = arith.constant 0 : index
    %c0_18 = arith.constant 0 : index
    %c0_19 = arith.constant 0 : index
    %37 = vector.load %arg7[%c0_17, %c0_18, %c0_19] : memref<1x32x128xf32, #tpu.memory_space<vmem>>, vector<1x32x128xf32>
    %38 = vector.shape_cast %37 : vector<1x32x128xf32> to vector<32x128xf32>
    %39 = vector.shape_cast %36 : vector<32x128xf32> to vector<1x32x128xf32>
    tpu.vector_store %arg7[%c0_17, %c0_18, %c0_19], %39 {strides = array<i32>} : memref<1x32x128xf32, #tpu.memory_space<vmem>>, vector<1x32x128xf32>,
    return
  }
  func.func @transform_0(%arg0: i32) -> (i32, i32, i32) {
    %c0_i32 = arith.constant 0 : i32
    %c0_i32_0 = arith.constant 0 : i32
    %c0_i32_1 = arith.constant 0 : i32
    return %arg0, %c0_i32, %c0_i32_0 : i32, i32, i32
  }
  func.func @transform_1(%arg0: i32) -> (i32, i32) {
    %c0_i32 = arith.constant 0 : i32
    %c0_i32_0 = arith.constant 0 : i32
    %c0_i32_1 = arith.constant 0 : i32
    return %c0_i32, %c0_i32_0 : i32, i32
  }
  func.func @transform_2(%arg0: i32) -> (i32, i32) {
    %c0_i32 = arith.constant 0 : i32
    %c0_i32_0 = arith.constant 0 : i32
    %c0_i32_1 = arith.constant 0 : i32
    return %c0_i32, %c0_i32_0 : i32, i32
  }
  func.func @transform_3(%arg0: i32) -> (i32, i32) {
    %c0_i32 = arith.constant 0 : i32
    %c0_i32_0 = arith.constant 0 : i32
    %c0_i32_1 = arith.constant 0 : i32
    return %c0_i32, %c0_i32_0 : i32, i32
  }
  func.func @transform_4(%arg0: i32) -> (i32, i32) {
    %c0_i32 = arith.constant 0 : i32
    %c0_i32_0 = arith.constant 0 : i32
    %c0_i32_1 = arith.constant 0 : i32
    return %c0_i32, %c0_i32_0 : i32, i32
  }
  func.func @transform_5(%arg0: i32) -> (i32, i32) {
    %c0_i32 = arith.constant 0 : i32
    %c0_i32_0 = arith.constant 0 : i32
    %c0_i32_1 = arith.constant 0 : i32
    return %c0_i32, %c0_i32_0 : i32, i32
  }
  func.func @transform_6(%arg0: i32) -> (i32, i32, i32) {
    %c0_i32 = arith.constant 0 : i32
    %c0_i32_0 = arith.constant 0 : i32
    %c0_i32_1 = arith.constant 0 : i32
    return %arg0, %c0_i32, %c0_i32_0 : i32, i32, i32
  }
}

</mosaic_0001>

<bundles_post_ra>
// kernel: tpu_custom_call.1
= control target key start
LH: loop header
LB: loop body
LE: loop exit
PB: predicated region body
PF: predicated region fallthrough
CT: control target
= control target key end

     0   :  { %11 = vsyncpa [#allocation3], 0  ;;  %s5176_s0 = inlined_call_operand.vmem [shape: f32[2,32,128], index: 0, kind: input, shape index: {}]   ;;  %s5177_s1 = inlined_call_operand.vmem [shape: f32[96,32], index: 1, kind: input, shape index: {}]   ;;  %s5178_s2 = inlined_call_operand.vmem [shape: f32[96,1], index: 2, kind: input, shape index: {}]   ;;  %s5179_s3 = inlined_call_operand.vmem [shape: f32[32,32], index: 3, kind: input, shape index: {}]   ;;  %s5180_s4 = inlined_call_operand.vmem [shape: f32[32,32], index: 4, kind: input, shape index: {}]   ;;  %s5181_s5 = inlined_call_operand.vmem [shape: f32[32,1], index: 5, kind: input, shape index: {}]   ;;  %s5182_s6 = inlined_call_operand.hbm [shape: f32[2,32,128], index: 6, kind: output, shape index: {}]  }
   0x1   :  { %13 = vsyncpa [#allocation3 + $0x1], 0  ;;  %s4536_s21 = smov 0   ;;  %s4538_s22 = smov 0  }
   0x2   :  { %s4540_s23 = smov 0   ;;  %s4542_s24 = smov 0  }
   0x3 LB: > { %s4557_s25 = sadd.s32 4294967295, %s4494_s24   ;;  %s3368_s26 = sadd.s32 4294967294, %s4494_s24   ;;  %s4494_s24 = sphi %s4542_s24, %s5188_s24   ;;  %s4490_s23 = sphi %s4540_s23, %s5187_s23   ;;  %s4486_s22 = sphi %s4538_s22, %s5186_s22   ;;  %s4482_s21 = sphi %s4536_s21, %s5185_s21  }
   0x4   : > { %s4561_s27 = sadd.s32 1, %s4494_s24   ;;  %s157_s28 = sadd.s32 1, %s4490_s23 }
   0x5   : > { %s154_s29 = ssub.s32 %s4494_s24, %s4561_s27  ;;  %p167_p0 = scmp.ne.s32.totalorder %s4490_s23, %s4486_s22 }
   0x6   : > { %p155_p1 = scmp.eq.s32.totalorder %s154_s29, 0  ;;  %p168_p2 = scmp.eq.s32.totalorder %s4557_s25, 1 }
   0x7   : > { %p173_p3 = scmp.ne.s32.totalorder %s4486_s22, %s4482_s21  ;;  %p174_p4 = scmp.eq.s32.totalorder %s3368_s26, 1 }
   0x8   : > { %s4572_s30 = scalar_select %p155_p1, %s4490_s23, %s157_s28  }
   0x9   : > { %p4574_p5 = por %p168_p2, %p167_p0  ;;  %p4578_p6 = por %p174_p4, %p173_p3 }
   0xa   : > { %p3371_p7 = scmp.ge.s32.totalorder %s4494_s24, 1  ;;  %p215_p8 = scmp.lt.s32.totalorder %s4494_s24, 3 }
   0xc   : > { %p216_p9 = pnand %p3371_p7, %p215_p8 }
   0xd   : > { %p245_p10 = scmp.lt.s32.totalorder (!%p216_p9), %s4557_s25, 1  ;;  %v254_v0 = vld [vmem:[%s5177_s1] sm:$0xff] (!%p216_p9)  ;;  %vm350_vm0 = vcmask (!%p216_p9), 261120   ;;  %v255_v3 = vld [vmem:[%s5177_s1 + $0x8] sm:$0xff] (!%p216_p9)  ;;  %v256_v11 = vld [vmem:[%s5177_s1 + $0x10] sm:$0xff] (!%p216_p9)  ;;  %s242_s16 = sand.u32 (!%p216_p9), 1, %s4486_s22  }
   0xe   : > { %219 = sbr.rel (%p216_p9) target bundleno = 1594 (0x63a), region = 44  ;;  %v352_v1 = vsel (!%p216_p9), %vm350_vm0, %v254_v0, 0  ;;  %v257_v12 = vld [vmem:[%s5177_s1 + $0x18] sm:$0xff] (!%p216_p9)  ;;  %v355_v14 = vsel (!%p216_p9), %vm350_vm0, %v255_v3, 0  ;;  %v258_v19 = vld [vmem:[%s5177_s1 + $0x20] sm:$0xff] (!%p216_p9)  ;;  %v358_v21 = vsel (!%p216_p9), %vm350_vm0, %v256_v11, 0 }
   0xf   : > { %v4590_v2 = vand.u32 (!%p216_p9), 4294901760, %v352_v1  ;;  %v361_v22 = vsel (!%p216_p9), %vm350_vm0, %v257_v12, 0  ;;  %v259_v27 = vld [vmem:[%s5177_s1 + $0x28] sm:$0xff] (!%p216_p9)  ;;  %v260_v28 = vld [vmem:[%s5177_s1 + $0x30] sm:$0xff] (!%p216_p9)  ;;  %v4640_v30 = vand.u32 (!%p216_p9), 4294901760, %v355_v14  ;;  %v364_v31 = vsel (!%p216_p9), %vm350_vm0, %v258_v19, 0 }
  0x10   : > { %v4653_v35 = vand.u32 (!%p216_p9), 4294901760, %v358_v21  ;;  %v4659_v37 = vand.u32 (!%p216_p9), 4294901760, %v361_v22  ;;  %v367_v38 = vsel (!%p216_p9), %vm350_vm0, %v259_v27, 0  ;;  %v370_v39 = vsel (!%p216_p9), %vm350_vm0, %v260_v28, 0  ;;  %v261_v46 = vld [vmem:[%s5177_s1 + $0x38] sm:$0xff] (!%p216_p9)  ;;  %s3372_s17 = sshll.u32 (!%p216_p9), %s242_s16, 5 }
  0x11   : > { %3657 = vmatprep.mubr.f32.mxu0 (!%p216_p9), %v4590_v2  ;;  %v4663_v43 = vand.u32 (!%p216_p9), 4294901760, %v364_v31  ;;  %v4666_v45 = vsub.f32 (!%p216_p9), %v355_v14, %v4640_v30  ;;  %v4672_v47 = vsub.f32 (!%p216_p9), %v352_v1, %v4590_v2  ;;  %v4687_v56 = vand.u32 (!%p216_p9), 4294901760, %v367_v38  ;;  %s244_s18 = scalar_lea.vmem (!%p216_p9), [#allocation2], %s3372_s17  ;;  %s3382_s20 = sshll.u32 (!%p216_p9), %s4557_s25, 9 }
  0x12   : > { %v4675_v48 = vsub.f32 (!%p216_p9), %v358_v21, %v4653_v35  ;;  %v4679_v50 = vsub.f32 (!%p216_p9), %v361_v22, %v4659_v37  ;;  %v4689_v57 = vand.u32 (!%p216_p9), 4294901760, %v370_v39  ;;  %v373_v58 = vsel (!%p216_p9), %vm350_vm0, %v261_v46, 0  ;;  %v264_v46 = vld [vmem:[%s5177_s1 + $0x50] sm:$0xff] (!%p216_p9)  ;;  %s3306_s19 = sshll.u32 (!%p216_p9), %s244_s18, 4  ;;  %s5131_s29 = scalar_lea.hbm (!%p216_p9), %s5182_s6, %s3382_s20  ;;  %s5124_s19 = int_to_ptr.vmem [resolvable:$true] %s3306_s19 }
  0x13   : > { %v4682_v51 = vsub.f32 (!%p216_p9), %v364_v31, %v4663_v43  ;;  %v458_v53 = vand.u32 (!%p216_p9), 4294901760, %v4672_v47  ;;  %v468_v54 = vand.u32 (!%p216_p9), 4294901760, %v4666_v45  ;;  %v4706_v1 = vsub.f32 (!%p216_p9), %v367_v38, %v4687_v56  ;;  %v272_v31 = vld [vmem:[%s5178_s2 + $0x30] sm:$0xff] (!%p216_p9)  ;;  %s4432_s9 = scalar_lea.vmem (!%p216_p9), %s5124_s19, 512  ;;  %s4498_s10 = smov (!%p216_p9), [#allocation2]  }
  0x14   : > { %v478_v55 = vand.u32 (!%p216_p9), 4294901760, %v4675_v48  ;;  %v488_v59 = vand.u32 (!%p216_p9), 4294901760, %v4679_v50  ;;  %v4709_v3 = vsub.f32 (!%p216_p9), %v370_v39, %v4689_v57  ;;  %v4496_v27 = vmov (!%p216_p9), 0   ;;  %v273_v39 = vld [vmem:[%s5178_s2 + $0x38] sm:$0xff] (!%p216_p9)  ;;  %p4433_p11 = scmp.ne.s32.totalorder (!%p216_p9), %s5124_s19, %s4432_s9 }
  0x15   : > { %s246_s11 = scalar_select %p245_p10, %s4557_s25, 1  ;;  %v498_v60 = vand.u32 4294901760, %v4682_v51  ;;  %v459_v61 = vsub.f32 %v4672_v47, %v458_v53  ;;  %v469_v62 = vsub.f32 %v4666_v45, %v468_v54  ;;  %4411 = vset.pattern.permute.xlu1 %v4496_v27  ;;  %4410 = vset.pattern.permute.xlu0 %v4496_v27 }
  0x16   : > { %v479_v63 = vsub.f32 %v4675_v48, %v478_v55  ;;  %v518_v11 = vand.u32 4294901760, %v4709_v3  ;;  %322 = vperm.xlu1 %4411, %v272_v31   ;;  %s5135_s25 = scalar_lea.sflag [#allocation3], %s242_s16  ;;  %p4434_p12 = pnand %p4433_p11, %p4574_p5 }
  0x17   : > { %s3381_s12 = sshll.u32 %s246_s11, 5  ;;  %s4436_s11 = sshll.u32 %s4498_s10, 4  ;;  %s4437_s11 = int_to_ptr.vmem [resolvable:$false] %s4436_s11 }
  0x18   : > { %s4596_s15 = scalar_lea.vmem %s5176_s0, %s3381_s12  ;;  %v519_v22 = vsub.f32 %v4709_v3, %v518_v11  ;;  %p4435_p13 = pneg %p4434_p12 }
  0x19   : > { %v250_v4 = vld [vmem:[%s4596_s15] sm:$0xff]  ;;  %v251_v5 = vld [vmem:[%s4596_s15 + $0x8] sm:$0xff]  ;;  %v252_v6 = vld [vmem:[%s4596_s15 + $0x10] sm:$0xff]  ;;  %p4439_p0 = scmp.lt.s32.totalorder %s5124_s19, %s4437_s11 }
  0x1a   : > { %v388_v7 = vand.u32 4294901760, %v250_v4  ;;  %v391_v8 = vand.u32 4294901760, %v251_v5  ;;  %v253_v9 = vld [vmem:[%s4596_s15 + $0x18] sm:$0xff]  ;;  %v394_v10 = vand.u32 4294901760, %v252_v6  ;;  %v520_v38 = vand.u32 4294901760, %v519_v22  ;;  %327 = vperm.xlu1 %4411, %v273_v39  }
  0x1b   : > { %v397_v13 = vand.u32 4294901760, %v253_v9 }
  0x1c   : > { %v4612_v15 = vpack.c.bf16 %v391_v8, %v388_v7  ;;  %v4614_v16 = vsub.f32 %v250_v4, %v388_v7  ;;  %v4616_v17 = vsub.f32 %v251_v5, %v391_v8  ;;  %v4618_v18 = vsub.f32 %v252_v6, %v394_v10 }
  0x1d   : > { %v4623_v20 = vsub.f32 %v253_v9, %v397_v13  ;;  %v4629_v25 = vpack.c.bf16 %v397_v13, %v394_v10  ;;  %v489_v4 = vsub.f32 %v4679_v50, %v488_v59  ;;  %v460_v5 = vand.u32 4294901760, %v459_v61  ;;  %v266_v61 = vld [vmem:[%s5178_s2] sm:$0xff] }
  0x1e   : > { %v579_v23 = vand.u32 4294901760, %v4614_v16  ;;  %v586_v24 = vand.u32 4294901760, %v4616_v17  ;;  %v593_v26 = vand.u32 4294901760, %v4618_v18  ;;  %4032 = vmatprep.subr.bf16.mxu1 %v4612_v15  ;;  %v4047_v0 = vpack.c.bf16 %v4616_v17, %v4614_v16 }
  0x1f   : > { %v600_v29 = vand.u32 4294901760, %v4623_v20  ;;  %4034 = vmatpush3.bf16.msra.mxu1 %v4612_v15  ;;  %v470_v6 = vand.u32 4294901760, %v469_v62  ;;  %v480_v7 = vand.u32 4294901760, %v479_v63  ;;  %v499_v8 = vsub.f32 %v4682_v51, %v498_v60  ;;  %3631 = vmatprep.mubr.f32.mxu1 %v460_v5  ;;  %v265_v63 = vld [vmem:[%s5177_s1 + $0x58] sm:$0xff] }
  0x20   : > { %v580_v32 = vsub.f32 %v4614_v16, %v579_v23  ;;  %v587_v33 = vsub.f32 %v4616_v17, %v586_v24  ;;  %v594_v34 = vsub.f32 %v4618_v18, %v593_v26  ;;  %4036 = vmatprep.subr.bf16.mxu1 %v4629_v25  ;;  %v4717_v9 = vand.u32 4294901760, %v373_v58 }
  0x21   : > { %v601_v36 = vsub.f32 %v4623_v20, %v600_v29  ;;  %v508_v10 = vand.u32 4294901760, %v4706_v1  ;;  %v4051_v12 = vpack.c.bf16 %v4623_v20, %v4618_v18  ;;  %v490_v14 = vand.u32 4294901760, %v489_v4  ;;  %v269_v4 = vld [vmem:[%s5178_s2 + $0x18] sm:$0xff] }
  0x22   : > { %v581_v40 = vand.u32 4294901760, %v580_v32  ;;  %v588_v41 = vand.u32 4294901760, %v587_v33  ;;  %v595_v42 = vand.u32 4294901760, %v594_v34  ;;  %v4724_v13 = vsub.f32 %v373_v58, %v4717_v9  ;;  %v270_v32 = vld [vmem:[%s5178_s2 + $0x20] sm:$0xff] }
  0x23   : > { %v602_v44 = vand.u32 4294901760, %v601_v36  ;;  %4038 = vmatpush3.bf16.msra.mxu1 %v4629_v25  ;;  %v509_v19 = vsub.f32 %v4706_v1, %v508_v10  ;;  %v500_v21 = vand.u32 4294901760, %v499_v8  ;;  %v262_v36 = vld [vmem:[%s5177_s1 + $0x40] sm:$0xff]  ;;  %312 = vperm.xlu0 %4410, %v270_v32   ;;  %v382_v62 = vsel %vm350_vm0, %v264_v46, 0 }
  0x24   : > { %v4039_v49 = vpack.c.bf16 %v588_v41, %v581_v40  ;;  %v528_v28 = vand.u32 4294901760, %v4724_v13  ;;  %v271_v40 = vld [vmem:[%s5178_s2 + $0x28] sm:$0xff]  ;;  %v376_v41 = vsel %vm350_vm0, %v262_v36, 0  ;;  %v4785_v5 = vand.u32 4294901760, %v382_v62 }
  0x25   : > { %v4043_v52 = vpack.c.bf16 %v602_v44, %v595_v42  ;;  %v510_v33 = vand.u32 4294901760, %v509_v19  ;;  %v263_v42 = vld [vmem:[%s5177_s1 + $0x48] sm:$0xff] }
  0x26   : > { %4040 = vmatprep.subr.bf16.mxu0 %v4039_v49  ;;  %3632 = vmatmul.mubr.f32.vlgmr.msra.gmra.mrb[0].mxu1 %v470_v6  ;;  %v529_v34 = vsub.f32 %v4724_v13, %v528_v28  ;;  %v379_v58 = vsel %vm350_vm0, %v263_v42, 0  ;;  %v385_v6 = vsel %vm350_vm0, %v265_v63, 0  ;;  %v557_v17 = vsub.f32 %v382_v62, %v4785_v5 }
  0x27   : > { %4042 = vmatpush3.bf16.msra.mxu0 %v4039_v49  ;;  %3634 = vmatprep.mubr.f32.mxu1 %v480_v7  ;;  %v267_v49 = vld [vmem:[%s5178_s2 + $0x8] sm:$0xff]  ;;  %v268_v7 = vld [vmem:[%s5178_s2 + $0x10] sm:$0xff]  ;;  %v4792_v8 = vand.u32 4294901760, %v385_v6 }
  0x28   : > { %4044 = vmatprep.subr.bf16.mxu0 %v4043_v52  ;;  %v530_v44 = vand.u32 4294901760, %v529_v34  ;;  %317 = vperm.xlu0 %4410, %v271_v40  }
  0x29   : > { %297 = vperm.xlu1 %4411, %v267_v49  }
  0x2a   : > { %3635 = vmatmul.mubr.f32.gmra.mrb[2].mxu1 %v490_v14 }
  0x2b   : > { %4046 = vmatpush3.bf16.msra.mxu0 %v4043_v52  ;;  %3637 = vmatprep.mubr.f32.mxu1 %v500_v21  ;;  %v4768_v52 = vand.u32 4294901760, %v376_v41 }
  0x2c   : > { %4048 = vmatprep.subr.bf16.mxu0 %v4047_v0  ;;  %292 = vperm.xlu0 %4410, %v266_v61  }
  0x2d   : > { %307 = vperm.xlu1 %4411, %v269_v4   ;;  %v537_v14 = vsub.f32 %v376_v41, %v4768_v52 }
  0x2e   : > { %3658 = vmatmul.mubr.f32.vlgmr.msra.gmra.mrb[0].mxu0 %v4640_v30  ;;  %3638 = vmatmul.mubr.f32.gmra.mrb[4].mxu1 %v510_v33 }
  0x2f   : > { %3660 = vmatprep.mubr.f32.mxu0 %v4653_v35  ;;  %4050 = vmatpush3.bf16.msra.mxu0 %v4047_v0  ;;  %v4779_v0 = vand.u32 4294901760, %v379_v58  ;;  %v538_v18 = vand.u32 4294901760, %v537_v14 }
  0x30   : > { %4052 = vmatprep.subr.bf16.mxu0 %v4051_v12  ;;  %3640 = vmatprep.mubr.f32.mxu1 %v520_v38 }
  0x31   : > { %302 = vperm.xlu0 %4410, %v268_v7   ;;  %v547_v16 = vsub.f32 %v379_v58, %v4779_v0 }
  0x32   : > { %3661 = vmatmul.mubr.f32.gmra.mrb[2].mxu0 %v4659_v37  ;;  %3641 = vmatmul.mubr.f32.gmra.mrb[6].mxu1 %v530_v44 }
  0x33   : > { %3663 = vmatprep.mubr.f32.mxu0 %v4663_v43  ;;  %4054 = vmatpush3.bf16.msra.mxu0 %v4051_v12  ;;  %v4063_v12 = vpack.c.bf16 %v586_v24, %v579_v23  ;;  %v567_v23 = vsub.f32 %v385_v6, %v4792_v8  ;;  %v4067_v24 = vpack.c.bf16 %v600_v29, %v593_v26  ;;  %v548_v20 = vand.u32 4294901760, %v547_v16 }
  0x34   : > { %4056 = vmatprep.subr.bf16.mxu0 %v4612_v15  ;;  %v558_v26 = vand.u32 4294901760, %v557_v17 }
  0x35   : > { %v568_v29 = vand.u32 4294901760, %v567_v23 }
  0x36   : > { %3664 = vmatmul.mubr.f32.gmra.mrb[4].mxu0 %v4687_v56 }
  0x37   : > { %3666 = vmatprep.mubr.f32.mxu0 %v4689_v57 }
  0x3a   : > { %3667 = vmatmul.mubr.f32.gmra.mrb[6].mxu0 %v4717_v9 }
  0x3b   : > { %3669 = vmatprep.mubr.f32.mxu0 %v4768_v52 }
  0x3e   : > { %3670 = vmatmul.mubr.f32.gmra.mrb[8].mxu0 %v4779_v0 }
  0x3f   : > { %3672 = vmatprep.mubr.f32.mxu0 %v4785_v5 }
  0x42   : > { %3673 = vmatmul.mubr.f32.gmra.mrb[10].mxu0 %v4792_v8 }
  0x43   : > { %3683 = vmatprep.mubr.f32.mxu0 %v4672_v47 }
  0x46   : > { %3684 = vmatmul.mubr.f32.vlgmr.msra.gmra.mrb[0].mxu0 %v4666_v45 }
  0x47   : > { %3686 = vmatprep.mubr.f32.mxu0 %v4675_v48  ;;  %4058 = vmatpush3.bf16.msra.mxu0 %v4612_v15 }
  0x48   : > { %4060 = vmatprep.subr.bf16.mxu0 %v4629_v25 }
  0x4a   : > { %3687 = vmatmul.mubr.f32.gmra.mrb[2].mxu0 %v4679_v50 }
  0x4b   : > { %3689 = vmatprep.mubr.f32.mxu0 %v4682_v51  ;;  %4062 = vmatpush3.bf16.msra.mxu0 %v4629_v25 }
  0x4c   : > { %4064 = vmatprep.subr.bf16.mxu0 %v4063_v12 }
  0x4e   : > { %3690 = vmatmul.mubr.f32.gmra.mrb[4].mxu0 %v4706_v1 }
  0x4f   : > { %3692 = vmatprep.mubr.f32.mxu0 %v4709_v3 }
  0x52   : > { %3693 = vmatmul.mubr.f32.gmra.mrb[6].mxu0 %v4724_v13 }
  0x53   : > { %3695 = vmatprep.mubr.f32.mxu0 %v537_v14 }
  0x56   : > { %3696 = vmatmul.mubr.f32.gmra.mrb[8].mxu0 %v547_v16 }
  0x57   : > { %3698 = vmatprep.mubr.f32.mxu0 %v557_v17 }
  0x5a   : > { %3699 = vmatmul.mubr.f32.gmra.mrb[10].mxu0 %v567_v23 }
  0x5b   : > { %3709 = vmatprep.mubr.f32.mxu0 %v458_v53 }
  0x5e   : > { %3710 = vmatmul.mubr.f32.vlgmr.msra.gmra.mrb[0].mxu0 %v468_v54 }
  0x5f   : > { %3712 = vmatprep.mubr.f32.mxu0 %v478_v55  ;;  %4066 = vmatpush3.bf16.msra.mxu0 %v4063_v12 }
  0x60   : > { %4068 = vmatprep.subr.bf16.mxu0 %v4067_v24 }
  0x62   : > { %3713 = vmatmul.mubr.f32.gmra.mrb[2].mxu0 %v488_v59 }
  0x63   : > { %3715 = vmatprep.mubr.f32.mxu0 %v498_v60  ;;  %4070 = vmatpush3.bf16.msra.mxu0 %v4067_v24 }
  0x64   : > { %4072 = vmatprep.subr.bf16.mxu0 %v4612_v15 }
  0x66   : > { %3716 = vmatmul.mubr.f32.gmra.mrb[4].mxu0 %v508_v10 }
  0x67   : > { %3718 = vmatprep.mubr.f32.mxu0 %v518_v11  ;;  %v1345_v11 = vlaneseq }
  0x69   : > { %v1346_v32 = vand.u32 127, %v1345_v11 }
  0x6a   : > { %3719 = vmatmul.mubr.f32.gmra.mrb[6].mxu0 %v528_v28 }
  0x6b   : > { %3721 = vmatprep.mubr.f32.mxu0 %v538_v18  ;;  %vm1347_vm1 = vcmp.lt.s32.totalorder %v1346_v32, 16 }
  0x6e   : > { %3722 = vmatmul.mubr.f32.gmra.mrb[8].mxu0 %v548_v20 }
  0x6f   : > { %3724 = vmatprep.mubr.f32.mxu0 %v558_v26 }
  0x72   : > { %3725 = vmatmul.mubr.f32.gmra.mrb[10].mxu0 %v568_v29 }
  0x73   : > { %3735 = vmatprep.mubr.f32.mxu0 %v4590_v2 }
  0x76   : > { %3736 = vmatmul.mubr.f32.vlgmr.msra.gmra.mrb[0].mxu0 %v4640_v30 }
  0x77   : > { %3738 = vmatprep.mubr.f32.mxu0 %v4653_v35  ;;  %4074 = vmatpush3.bf16.msra.mxu0 %v4612_v15  ;;  %v549_v15 = vsub.f32 %v547_v16, %v548_v20 }
  0x78   : > { %4076 = vmatprep.subr.bf16.mxu0 %v4629_v25 }
  0x7a   : > { %3739 = vmatmul.mubr.f32.gmra.mrb[2].mxu0 %v4659_v37 }
  0x7b   : > { %3741 = vmatprep.mubr.f32.mxu0 %v4663_v43  ;;  %4078 = vmatpush3.bf16.msra.mxu0 %v4629_v25 }
  0x7e   : > { %3742 = vmatmul.mubr.f32.gmra.mrb[4].mxu0 %v4687_v56 }
  0x7f   : > { %3744 = vmatprep.mubr.f32.mxu0 %v4689_v57 }
  0x82   : > { %3745 = vmatmul.mubr.f32.gmra.mrb[6].mxu0 %v4717_v9 }
  0x83   : > { %3747 = vmatprep.mubr.f32.mxu0 %v4768_v52 }
  0x86   : > { %3748 = vmatmul.mubr.f32.gmra.mrb[8].mxu0 %v4779_v0 }
  0x87   : > { %3750 = vmatprep.mubr.f32.mxu0 %v4785_v5 }
  0x8a   : > { %3751 = vmatmul.mubr.f32.gmra.mrb[10].mxu0 %v4792_v8 }
  0x8b   : > { %3761 = vmatprep.mubr.f32.mxu0 %v4590_v2  ;;  %v539_v2 = vsub.f32 %v537_v14, %v538_v18 }
  0x8d   : > { %v540_v25 = vand.u32 4294901760, %v539_v2 }
  0x8e   : > { %3762 = vmatmul.mubr.f32.vlgmr.msra.gmra.mrb[0].mxu0 %v4640_v30  ;;  %v550_v30 = vand.u32 4294901760, %v549_v15 }
  0x8f   : > { %3764 = vmatprep.mubr.f32.mxu0 %v4653_v35  ;;  %3643 = vmatprep.mubr.f32.mxu1 %v540_v25  ;;  %v559_v35 = vsub.f32 %v557_v17, %v558_v26 }
  0x90   : > { %3644 = vmatmul.mubr.f32.gmra.mrb[8].mxu1 %v550_v30 }
  0x92   : > { %3765 = vmatmul.mubr.f32.gmra.mrb[2].mxu0 %v4659_v37  ;;  %v569_v37 = vsub.f32 %v567_v23, %v568_v29 }
  0x93   : > { %3767 = vmatprep.mubr.f32.mxu0 %v4663_v43  ;;  %v560_v43 = vand.u32 4294901760, %v559_v35 }
  0x94   : > { %v570_v45 = vand.u32 4294901760, %v569_v37 }
  0x95   : > { %3646 = vmatprep.mubr.f32.mxu1 %v560_v43 }
  0x96   : > { %3768 = vmatmul.mubr.f32.gmra.mrb[4].mxu0 %v4687_v56  ;;  %3647 = vmatmul.mubr.f32.gmra.mrb[10].mxu1 %v570_v45 }
  0x97   : > { %3770 = vmatprep.mubr.f32.mxu0 %v4689_v57  ;;  %v323_v57 = vpop.permute.xlu1 %322 }
  0x9a   : > { %3771 = vmatmul.mubr.f32.gmra.mrb[6].mxu0 %v4717_v9 }
  0x9b   : > { %3773 = vmatprep.mubr.f32.mxu0 %v4768_v52  ;;  %v328_v60 = vpop.permute.xlu1 %327  ;;  %v4497_v52 = vmov 0.0  }
  0x9c   : > { %v3375_v58 = vsel %vm1347_vm1, 1.0, %v4497_v52 }
  0x9e   : > { %3774 = vmatmul.mubr.f32.gmra.mrb[8].mxu0 %v4779_v0 }
  0x9f   : > { %3776 = vmatprep.mubr.f32.mxu0 %v4785_v5 }
  0xa2   : > { %3777 = vmatmul.mubr.f32.gmra.mrb[10].mxu0 %v4792_v8  ;;  %v313_v59 = vpop.permute.xlu0 %312 }
  0xa7   : > { %v318_v1 = vpop.permute.xlu0 %317 }
  0xa8   : > { %v298_v3 = vpop.permute.xlu1 %297 }
  0xab   : > { %v293_v9 = vpop.permute.xlu0 %292 }
  0xac   : > { %v308_v19 = vpop.permute.xlu1 %307 }
  0xb0   : > { %v303_v21 = vpop.permute.xlu0 %302 }
  0xf9   : > { %v3633_v47 = vpop.f32.mrb[0].mxu1 }
  0xfa   : > { %v462_v48 = vpop.f32.mrb[1].mxu1  ;;  %v473_v10 = vadd.f32 %v3633_v47, %v298_v3 }
  0xfb   : > { %v463_v13 = vadd.f32 %v462_v48, %v293_v9 }
  0xfd   : > { %v3636_v50 = vpop.f32.mrb[2].mxu1 }
  0xfe   : > { %v482_v51 = vpop.f32.mrb[3].mxu1  ;;  %v493_v31 = vadd.f32 %v3636_v50, %v308_v19 }
  0xff   : > { %v483_v34 = vadd.f32 %v482_v51, %v303_v21 }
 0x101   : > { %v3639_v53 = vpop.f32.mrb[4].mxu1 }
 0x102   : > { %v502_v54 = vpop.f32.mrb[5].mxu1  ;;  %v513_v44 = vadd.f32 %v3639_v53, %v318_v1 }
 0x103   : > { %v503_v46 = vadd.f32 %v502_v54, %v313_v59 }
 0x105   : > { %v3642_v55 = vpop.f32.mrb[6].mxu1 }
 0x106   : > { %v522_v56 = vpop.f32.mrb[7].mxu1  ;;  %v533_v0 = vadd.f32 %v3642_v55, %v328_v60 }
 0x107   : > { %v523_v5 = vadd.f32 %v522_v56, %v323_v57 }
 0x161   : > { %v3763_v22 = vpop.f32.mrb[0].mxu0 }
 0x162   : > { %v4228_v27 = vadd.f32 %v3763_v22, %v473_v10  ;;  %v1275_v28 = vpop.f32.mrb[1].mxu0 }
 0x163   : > { %v4230_v33 = vadd.f32 %v1275_v28, %v463_v13 }
 0x164   : > { %v4872_v20 = vand.u32 4294901760, %v4228_v27 }
 0x165   : > { %v4863_v36 = vand.u32 4294901760, %v4230_v33  ;;  %v3766_v38 = vpop.f32.mrb[2].mxu0 }
 0x166   : > { %v4232_v39 = vadd.f32 %v3766_v38, %v493_v31  ;;  %v1287_v40 = vpop.f32.mrb[3].mxu0  ;;  %v1434_v51 = vsub.f32 %v4228_v27, %v4872_v20 }
 0x167   : > { %v4866_v41 = vsub.f32 %v4230_v33, %v4863_v36  ;;  %v4234_v42 = vadd.f32 %v1287_v40, %v483_v34 }
 0x168   : > { %v4884_v53 = vand.u32 4294901760, %v4232_v39  ;;  %v1435_v22 = vand.u32 4294901760, %v1434_v51 }
 0x169   : > { %v3769_v49 = vpop.f32.mrb[4].mxu0  ;;  %v1425_v61 = vand.u32 4294901760, %v4866_v41  ;;  %v4878_v35 = vand.u32 4294901760, %v4234_v42 }
 0x16a   : > { %v4236_v62 = vadd.f32 %v3769_v49, %v513_v44  ;;  %v1299_v63 = vpop.f32.mrb[5].mxu0  ;;  %v1454_v28 = vsub.f32 %v4232_v39, %v4884_v53 }
 0x16b   : > { %v4238_v4 = vadd.f32 %v1299_v63, %v503_v46  ;;  %v1426_v6 = vsub.f32 %v4866_v41, %v1425_v61  ;;  %v1444_v3 = vsub.f32 %v4234_v42, %v4878_v35  ;;  %v1436_v42 = vsub.f32 %v1434_v51, %v1435_v22  ;;  %v4910_v63 = vpop.f32.mrb[8].mxu1 }
 0x16c   : > { %v1351_v7 = vmul.f32 %v4236_v62, %v3375_v58  ;;  %v1455_v46 = vand.u32 4294901760, %v1454_v28 }
 0x16d   : > { %v1350_v8 = vmul.f32 %v4238_v4, %v3375_v58  ;;  %v3772_v12 = vpop.f32.mrb[6].mxu0  ;;  %v1427_v14 = vand.u32 4294901760, %v1426_v6  ;;  %v1445_v34 = vand.u32 4294901760, %v1444_v3  ;;  %v1437_v52 = vand.u32 4294901760, %v1436_v42 }
 0x16e   : > { %v1358_v16 = vand.u32 4294901760, %v1351_v7  ;;  %v4240_v17 = vadd.f32 %v3772_v12, %v533_v0  ;;  %v1311_v23 = vpop.f32.mrb[7].mxu0  ;;  %v542_v0 = vpop.f32.mrb[9].mxu1 }
 0x16f   : > { %v1355_v24 = vand.u32 4294901760, %v1350_v8  ;;  %v4242_v18 = vadd.f32 %v1311_v23, %v523_v5  ;;  %3787 = vmatprep.mubr.f32.mxu1 %v1427_v14  ;;  %v1446_v49 = vsub.f32 %v1444_v3, %v1445_v34  ;;  %v4912_v4 = vpop.f32.mrb[10].mxu1  ;;  %v278_v5 = vld [vmem:[%s5179_s3] sm:$0xff]  ;;  %v280_v14 = vld [vmem:[%s5179_s3 + $0x10] sm:$0xff]  ;;  %v281_v23 = vld [vmem:[%s5179_s3 + $0x18] sm:$0xff] }
 0x170   : > { %v1472_v26 = vsub.f32 %v1351_v7, %v1358_v16  ;;  %v1353_v29 = vmul.f32 %v4240_v17, %v3375_v58 }
 0x171   : > { %v4874_v2 = vpack.c.bf16 %v1358_v16, %v1355_v24  ;;  %v1465_v15 = vsub.f32 %v1350_v8, %v1355_v24  ;;  %v1352_v25 = vmul.f32 %v4242_v18, %v3375_v58  ;;  %v4876_v30 = vpop.f32.mrb[8].mxu0  ;;  %v1456_v58 = vsub.f32 %v1454_v28, %v1455_v46 }
 0x172   : > { %v1364_v37 = vand.u32 4294901760, %v1353_v29  ;;  %v4880_v43 = vpop.f32.mrb[9].mxu0  ;;  %v1473_v45 = vand.u32 4294901760, %v1472_v26  ;;  %v1447_v62 = vand.u32 4294901760, %v1446_v49 }
 0x173   : > { %v1361_v47 = vand.u32 4294901760, %v1352_v25  ;;  %4080 = vmatprep.subr.bf16.mxu1 %v4874_v2  ;;  %v1466_v48 = vand.u32 4294901760, %v1465_v15  ;;  %v4095_v50 = vpack.c.bf16 %v1472_v26, %v1465_v15  ;;  %v1457_v39 = vand.u32 4294901760, %v1456_v58 }
 0x174   : > { %v1486_v54 = vsub.f32 %v1353_v29, %v1364_v37  ;;  %4082 = vmatpush3.bf16.xpose.msra.mxu1 %v4874_v2  ;;  %v1474_v55 = vsub.f32 %v1472_v26, %v1473_v45 }
 0x175   : > { %v4887_v56 = vpack.c.bf16 %v1364_v37, %v1361_v47  ;;  %v1479_v57 = vsub.f32 %v1352_v25, %v1361_v47  ;;  %v4889_v59 = vpop.f32.mrb[10].mxu0  ;;  %v1467_v60 = vsub.f32 %v1465_v15, %v1466_v48  ;;  %v4111_v1 = vpack.c.bf16 %v1473_v45, %v1466_v48 }
 0x176   : > { %v4892_v9 = vpop.f32.mrb[11].mxu0  ;;  %v1475_v10 = vand.u32 4294901760, %v1474_v55  ;;  %v1487_v11 = vand.u32 4294901760, %v1486_v54 }
 0x177   : > { %4084 = vmatprep.subr.bf16.mxu1 %v4887_v56  ;;  %v1468_v13 = vand.u32 4294901760, %v1467_v60  ;;  %v1480_v19 = vand.u32 4294901760, %v1479_v57  ;;  %v4099_v21 = vpack.c.bf16 %v1486_v54, %v1479_v57 }
 0x178   : > { %v1488_v27 = vsub.f32 %v1486_v54, %v1487_v11 }
 0x179   : > { %v4087_v31 = vpack.c.bf16 %v1475_v10, %v1468_v13  ;;  %v1481_v32 = vsub.f32 %v1479_v57, %v1480_v19  ;;  %v4115_v33 = vpack.c.bf16 %v1487_v11, %v1480_v19  ;;  %v275_v13 = vld [vmem:[%s5178_s2 + $0x48] sm:$0xff] }
 0x17a   : > { %v1489_v38 = vand.u32 4294901760, %v1488_v27  ;;  %v286_v27 = vld [vmem:[%s5181_s5] sm:$0xff] }
 0x17b   : > { %v1482_v40 = vand.u32 4294901760, %v1481_v32  ;;  %v277_v32 = vld [vmem:[%s5178_s2 + $0x58] sm:$0xff] }
 0x17c   : > { %4086 = vmatpush3.bf16.xpose.msra.mxu1 %v4887_v56 }
 0x17d   : > { %4088 = vmatprep.subr.bf16.mxu1 %v4087_v31  ;;  %v4091_v44 = vpack.c.bf16 %v1489_v38, %v1482_v40 }
 0x183   : > { %3788 = vmatmul.mubr.f32.vlgmr.msra.gmra.mrb[12].mxu1 %v1437_v52 }
 0x184   : > { %3790 = vmatprep.mubr.f32.mxu1 %v1447_v62  ;;  %4090 = vmatpush3.bf16.xpose.msra.mxu1 %v4087_v31 }
 0x185   : > { %4092 = vmatprep.subr.bf16.mxu1 %v4091_v44 }
 0x187   : > { %3791 = vmatmul.mubr.f32.gmra.mrb[14].mxu1 %v1457_v39 }
 0x188   : > { %3801 = vmatprep.mubr.f32.mxu1 %v4863_v36 }
 0x18c   : > { %4094 = vmatpush3.bf16.xpose.msra.mxu1 %v4091_v44 }
 0x18d   : > { %4096 = vmatprep.subr.bf16.mxu1 %v4095_v50 }
 0x193   : > { %3802 = vmatmul.mubr.f32.vlgmr.msra.gmra.mrb[12].mxu1 %v4872_v20 }
 0x194   : > { %3804 = vmatprep.mubr.f32.mxu1 %v4878_v35  ;;  %4098 = vmatpush3.bf16.xpose.msra.mxu1 %v4095_v50 }
 0x195   : > { %4100 = vmatprep.subr.bf16.mxu1 %v4099_v21 }
 0x197   : > { %3805 = vmatmul.mubr.f32.gmra.mrb[14].mxu1 %v4884_v53 }
 0x198   : > { %3815 = vmatprep.mubr.f32.mxu1 %v4866_v41  ;;  %v4914_v41 = vpop.f32.mrb[11].mxu1 }
 0x19c   : > { %4102 = vmatpush3.bf16.xpose.msra.mxu1 %v4099_v21  ;;  %v288_v21 = vld [vmem:[%s5181_s5 + $0x10] sm:$0xff] }
 0x19d   : > { %4104 = vmatprep.subr.bf16.mxu1 %v4874_v2 }
 0x1a3   : > { %3816 = vmatmul.mubr.f32.vlgmr.msra.gmra.mrb[12].mxu1 %v1434_v51 }
 0x1a4   : > { %3818 = vmatprep.mubr.f32.mxu1 %v1444_v3  ;;  %4106 = vmatpush3.bf16.xpose.msra.mxu1 %v4874_v2 }
 0x1a5   : > { %4108 = vmatprep.subr.bf16.mxu1 %v4887_v56 }
 0x1a7   : > { %3819 = vmatmul.mubr.f32.gmra.mrb[14].mxu1 %v1454_v28 }
 0x1a8   : > { %3829 = vmatprep.mubr.f32.mxu1 %v1425_v61  ;;  %v279_v61 = vld [vmem:[%s5179_s3 + $0x8] sm:$0xff] }
 0x1ac   : > { %4110 = vmatpush3.bf16.xpose.msra.mxu1 %v4887_v56 }
 0x1ad   : > { %4112 = vmatprep.subr.bf16.mxu1 %v4111_v1 }
 0x1b3   : > { %3830 = vmatmul.mubr.f32.vlgmr.msra.gmra.mrb[12].mxu1 %v1435_v22 }
 0x1b4   : > { %3832 = vmatprep.mubr.f32.mxu1 %v1445_v34  ;;  %4114 = vmatpush3.bf16.xpose.msra.mxu1 %v4111_v1  ;;  %v287_v34 = vld [vmem:[%s5181_s5 + $0x8] sm:$0xff] }
 0x1b5   : > { %4116 = vmatprep.subr.bf16.mxu1 %v4115_v33 }
 0x1b7   : > { %3833 = vmatmul.mubr.f32.gmra.mrb[14].mxu1 %v1455_v46 }
 0x1b8   : > { %3843 = vmatprep.mubr.f32.mxu1 %v4863_v36 }
 0x1bc   : > { %4118 = vmatpush3.bf16.xpose.msra.mxu1 %v4115_v33  ;;  %v289_v33 = vld [vmem:[%s5181_s5 + $0x18] sm:$0xff] }
 0x1bd   : > { %4120 = vmatprep.subr.bf16.mxu1 %v4874_v2 }
 0x1c3   : > { %3844 = vmatmul.mubr.f32.vlgmr.msra.gmra.mrb[12].mxu1 %v4872_v20 }
 0x1c4   : > { %3846 = vmatprep.mubr.f32.mxu1 %v4878_v35  ;;  %4122 = vmatpush3.bf16.xpose.msra.mxu1 %v4874_v2  ;;  %v274_v2 = vld [vmem:[%s5178_s2 + $0x40] sm:$0xff] }
 0x1c5   : > { %4124 = vmatprep.subr.bf16.mxu1 %v4887_v56 }
 0x1c7   : > { %3847 = vmatmul.mubr.f32.gmra.mrb[14].mxu1 %v4884_v53 }
 0x1c8   : > { %3857 = vmatprep.mubr.f32.mxu1 %v4863_v36 }
 0x1cc   : > { %4126 = vmatpush3.bf16.xpose.msra.mxu1 %v4887_v56 }
 0x1d3   : > { %3858 = vmatmul.mubr.f32.vlgmr.msra.gmra.mrb[12].mxu1 %v4872_v20 }
 0x1d4   : > { %3860 = vmatprep.mubr.f32.mxu1 %v4878_v35 }
 0x1d7   : > { %3861 = vmatmul.mubr.f32.gmra.mrb[14].mxu1 %v4884_v53 }
 0x2a6   : > { %v3859_v6 = vpop.f32.mrb[12].mxu1 }
 0x2a7   : > { %v4251_v7 = vadd.f32 %v3859_v6, %v279_v61  ;;  %v1946_v8 = vpop.f32.mrb[13].mxu1 }
 0x2a8   : > { %v4252_v36 = vadd.f32 %v1946_v8, %v278_v5 }
 0x2a9   : > { %v1971_v12 = vsel %vm350_vm0, %v4251_v7, -inf }
 0x2aa   : > { %1972 = vmax.xlane.f32.xlu1 %v1971_v12  ;;  %v3862_v16 = vpop.f32.mrb[14].mxu1  ;;  %v1968_v17 = vsel %vm350_vm0, %v4252_v36, -inf }
 0x2ab   : > { %v1958_v24 = vpop.f32.mrb[15].mxu1  ;;  %1969 = vmax.xlane.f32.xlu0 %v1968_v17  ;;  %v4253_v20 = vadd.f32 %v3862_v16, %v281_v23 }
 0x2ac   : > { %v4254_v18 = vadd.f32 %v1958_v24, %v280_v14 }
 0x2ad   : > { %v1977_v29 = vsel %vm350_vm0, %v4253_v20, -inf }
 0x2ae   : > { %v1974_v26 = vsel %vm350_vm0, %v4254_v18, -inf }
 0x2af   : > { %1975 = vmax.xlane.f32.xlu0 %v1974_v26 }
 0x2b3   : > { %1978 = vmax.xlane.f32.xlu0 %v1977_v29 }
 0x2bb   : > { %332 = vperm.xlu1 %4411, %v274_v2  }
 0x337   : > { %v1973_v15 = vpop.xlane.xlu1 %1972 }
 0x338   : > { %v1981_v25 = vsub.f32 %v4251_v7, %v1973_v15  ;;  %v1970_v35 = vpop.xlane.xlu0 %1969 }
 0x339   : > { %v1980_v37 = vsub.f32 %v4252_v36, %v1970_v35 }
 0x33a   : > { %v1986_v45 = vmul.f32 1.442695, %v1981_v25 }
 0x33b   : > { %v1984_v47 = vmul.f32 1.442695, %v1980_v37  ;;  %v333_v48 = vpop.permute.xlu1 %332 }
 0x33c   : > { %4412 = vpow2.f32 %v1986_v45  ;;  %v543_v50 = vadd.f32 %v542_v0, %v333_v48  ;;  %v1976_v51 = vpop.xlane.xlu0 %1975 }
 0x33d   : > { %4414 = vpow2.f32 %v1984_v47  ;;  %v1982_v19 = vsub.f32 %v4254_v18, %v1976_v51 }
 0x33e   : > { %v4246_v53 = vadd.f32 %v4880_v43, %v543_v50  ;;  %v276_v43 = vld [vmem:[%s5178_s2 + $0x50] sm:$0xff] }
 0x33f   : > { %v1988_v22 = vmul.f32 1.442695, %v1982_v19 }
 0x340   : > { %v1979_v54 = vpop.xlane.xlu0 %1978  ;;  %v2025_v62 = vand.u32 4294901760, %v4246_v53 }
 0x341   : > { %v1983_v55 = vsub.f32 %v4253_v20, %v1979_v54 }
 0x342   : > { %v2135_v5 = vsub.f32 %v4246_v53, %v2025_v62 }
 0x343   : > { %v1990_v56 = vmul.f32 1.442695, %v1983_v55 }
 0x344   : > { %v2136_v12 = vand.u32 4294901760, %v2135_v5 }
 0x345   : > { %4416 = vpow2.f32 %v1990_v56 }
 0x346   : > { %v4946_v57 = vpop.eup %4412  ;;  %4418 = vpow2.f32 %v1988_v22 }
 0x347   : > { %v4415_v60 = vpop.eup %4414  ;;  %v1995_v1 = vsel %vm350_vm0, %v4946_v57, 0.0 }
 0x348   : > { %1996 = vadd.xlane.f32.xlu0 %v1995_v1  ;;  %v1992_v3 = vsel %vm350_vm0, %v4415_v60, 0.0 }
 0x349   : > { %1993 = vadd.xlane.f32.xlu1 %v1992_v3 }
 0x34f   : > { %v4951_v10 = vpop.eup %4416 }
 0x350   : > { %v2001_v11 = vsel %vm350_vm0, %v4951_v10, 0.0  ;;  %v4967_v28 = vpop.eup %4418 }
 0x351   : > { %2002 = vadd.xlane.f32.xlu0 %v2001_v11  ;;  %v1998_v31 = vsel %vm350_vm0, %v4967_v28, 0.0 }
 0x35a   : > { %342 = vperm.xlu1 %4411, %v276_v43  }
 0x367   : > { %337 = vperm.xlu0 %4410, %v275_v13  }
 0x36b   : > { %2650 = vperm.xlu0 %4410, %v288_v21  }
 0x36f   : > { %2640 = vperm.xlu0 %4410, %v286_v27  }
 0x37e   : > { %1999 = vadd.xlane.f32.xlu1 %v1998_v31 }
 0x38f   : > { %347 = vperm.xlu1 %4411, %v277_v32  }
 0x393   : > { %2655 = vperm.xlu1 %4411, %v289_v33  }
 0x397   : > { %2645 = vperm.xlu1 %4411, %v287_v34  }
 0x3d5   : > { %v1997_v46 = vpop.xlane.xlu0 %1996 }
 0x3d6   : > { %v1994_v38 = vpop.xlane.xlu1 %1993 }
 0x3d7   : > { %4420 = vrcp.f32 %v1994_v38 }
 0x3d8   : > { %4422 = vrcp.f32 %v1997_v46 }
 0x3da   : > { %v343_v40 = vpop.permute.xlu1 %342 }
 0x3db   : > { %v563_v42 = vadd.f32 %v4914_v41, %v343_v40 }
 0x3dd   : > { %v4250_v44 = vadd.f32 %v4892_v9, %v563_v42 }
 0x3de   : > { %v2003_v58 = vpop.xlane.xlu0 %2002 }
 0x3df   : > { %4424 = vrcp.f32 %v2003_v58  ;;  %v2031_v47 = vand.u32 4294901760, %v4250_v44 }
 0x3e1   : > { %v4421_v49 = vpop.eup %4420  ;;  %v2149_v53 = vsub.f32 %v4250_v44, %v2031_v47 }
 0x3e2   : > { %v2008_v52 = vmul.f32 %v4421_v49, %v4415_v60  ;;  %v4423_v2 = vpop.eup %4422 }
 0x3e3   : > { %v2009_v15 = vmul.f32 %v4423_v2, %v4946_v57  ;;  %v2150_v3 = vand.u32 4294901760, %v2149_v53 }
 0x3e4   : > { %v2013_v39 = vsel %vm350_vm0, %v2008_v52, 0 }
 0x3e5   : > { %v4983_v0 = vand.u32 4294901760, %v2013_v39  ;;  %v2016_v25 = vsel %vm350_vm0, %v2009_v15, 0  ;;  %v2151_v22 = vsub.f32 %v2149_v53, %v2150_v3 }
 0x3e6   : > { %v338_v61 = vpop.permute.xlu0 %337  ;;  %v5004_v37 = vand.u32 4294901760, %v2016_v25 }
 0x3e7   : > { %v553_v6 = vadd.f32 %v4910_v63, %v338_v61  ;;  %v4987_v7 = vsub.f32 %v2013_v39, %v4983_v0  ;;  %v2137_v63 = vsub.f32 %v2135_v5, %v2136_v12  ;;  %v2152_v40 = vand.u32 4294901760, %v2151_v22  ;;  %v282_v39 = vld [vmem:[%s5180_s4] sm:$0xff] }
 0x3e8   : > { %v2104_v50 = vsub.f32 %v2016_v25, %v5004_v37  ;;  %v2659_v61 = vsel %vm350_vm0, %v282_v39, 0 }
 0x3e9   : > { %v4244_v41 = vadd.f32 %v4876_v30, %v553_v6  ;;  %v2095_v9 = vand.u32 4294901760, %v4987_v7  ;;  %v2138_v20 = vand.u32 4294901760, %v2137_v63  ;;  %v4425_v35 = vpop.eup %4424 }
 0x3ea   : > { %v2011_v48 = vmul.f32 %v4425_v35, %v4951_v10  ;;  %v2105_v57 = vand.u32 4294901760, %v2104_v50 }
 0x3eb   : > { %v2028_v8 = vand.u32 4294901760, %v4244_v41  ;;  %v2096_v36 = vsub.f32 %v4987_v7, %v2095_v9 }
 0x3ec   : > { %v2022_v55 = vsel %vm350_vm0, %v2011_v48, 0  ;;  %v2106_v10 = vsub.f32 %v2104_v50, %v2105_v57 }
 0x3ed   : > { %v4994_v14 = vpack.c.bf16 %v2028_v8, %v2025_v62  ;;  %v2142_v16 = vsub.f32 %v4244_v41, %v2028_v8  ;;  %v2097_v17 = vand.u32 4294901760, %v2096_v36  ;;  %v5011_v60 = vand.u32 4294901760, %v2022_v55 }
 0x3ee   : > { %v2107_v31 = vand.u32 4294901760, %v2106_v10 }
 0x3ef   : > { %4128 = vmatprep.subr.bf16.mxu1 %v4994_v14  ;;  %3871 = vmatprep.mubr.f32.mxu1 %v2097_v17  ;;  %v2143_v23 = vand.u32 4294901760, %v2142_v16  ;;  %v4997_v24 = vpack.c.bf16 %v2142_v16, %v2135_v5  ;;  %v2124_v21 = vsub.f32 %v2022_v55, %v5011_v60  ;;  %v5040_v5 = vand.u32 4294901760, %v2659_v61 }
 0x3f0   : > { %4130 = vmatpush3.bf16.msra.mxu1 %v4994_v14 }
 0x3f1   : > { %v2144_v30 = vsub.f32 %v2142_v16, %v2143_v23  ;;  %v5000_v18 = vpack.c.bf16 %v2143_v23, %v2136_v12  ;;  %v2125_v38 = vand.u32 4294901760, %v2124_v21  ;;  %v5043_v6 = vsub.f32 %v2659_v61, %v5040_v5  ;;  %v283_v12 = vld [vmem:[%s5180_s4 + $0x8] sm:$0xff]  ;;  %v285_v16 = vld [vmem:[%s5180_s4 + $0x18] sm:$0xff] }
 0x3f2   : > { %v2668_v63 = vsel %vm350_vm0, %v285_v16, 0 }
 0x3f3   : > { %v2145_v26 = vand.u32 4294901760, %v2144_v30  ;;  %v2126_v49 = vsub.f32 %v2124_v21, %v2125_v38  ;;  %v2741_v41 = vand.u32 4294901760, %v5043_v6 }
 0x3f5   : > { %v4135_v29 = vpack.c.bf16 %v2145_v26, %v2138_v20  ;;  %v2127_v62 = vand.u32 4294901760, %v2126_v49  ;;  %v2742_v8 = vsub.f32 %v5043_v6, %v2741_v41 }
 0x3f7   : > { %v2743_v36 = vand.u32 4294901760, %v2742_v8 }
 0x3f9   : > { %3955 = vmatprep.mubr.f32.mxu0 %v2743_v36  ;;  %v4428_v36 = vld [vmem:[%s4596_s15 + $0x18] sm:$0xff] }
 0x40b   : > { %v2000_v45 = vpop.xlane.xlu1 %1999 }
 0x40c   : > { %4426 = vrcp.f32 %v2000_v45 }
 0x40f   : > { %v348_v51 = vpop.permute.xlu1 %347 }
 0x410   : > { %v573_v54 = vadd.f32 %v4912_v4, %v348_v51 }
 0x412   : > { %v4248_v56 = vadd.f32 %v4889_v59, %v573_v54 }
 0x414   : > { %v2034_v1 = vand.u32 4294901760, %v4248_v56 }
 0x416   : > { %v4427_v11 = vpop.eup %4426  ;;  %v4131_v43 = vpack.c.bf16 %v2034_v1, %v2031_v47  ;;  %v2156_v13 = vsub.f32 %v4248_v56, %v2034_v1 }
 0x417   : > { %v2010_v19 = vmul.f32 %v4427_v11, %v4967_v28 }
 0x418   : > { %4132 = vmatprep.subr.bf16.mxu1 %v4131_v43  ;;  %v2157_v4 = vand.u32 4294901760, %v2156_v13  ;;  %v4147_v27 = vpack.c.bf16 %v2156_v13, %v2149_v53 }
 0x419   : > { %4134 = vmatpush3.bf16.msra.mxu1 %v4131_v43  ;;  %v2019_v59 = vsel %vm350_vm0, %v2010_v19, 0 }
 0x41a   : > { %4136 = vmatprep.subr.bf16.mxu1 %v4135_v29  ;;  %v2158_v32 = vsub.f32 %v2156_v13, %v2157_v4  ;;  %v2113_v33 = vand.u32 4294901760, %v2019_v59  ;;  %v4163_v34 = vpack.c.bf16 %v2157_v4, %v2150_v3 }
 0x41c   : > { %3872 = vmatmul.mubr.f32.vlgmr.msra.gmra.mrb[16].mxu1 %v2107_v31  ;;  %v2159_v42 = vand.u32 4294901760, %v2158_v32  ;;  %v2114_v44 = vsub.f32 %v2019_v59, %v2113_v33 }
 0x41d   : > { %4138 = vmatpush3.bf16.msra.mxu1 %v4135_v29 }
 0x41e   : > { %v4139_v28 = vpack.c.bf16 %v2159_v42, %v2152_v40  ;;  %v2115_v46 = vand.u32 4294901760, %v2114_v44 }
 0x420   : > { %4140 = vmatprep.subr.bf16.mxu1 %v4139_v28  ;;  %v2116_v52 = vsub.f32 %v2114_v44, %v2115_v46 }
 0x421   : > { %4142 = vmatpush3.bf16.msra.mxu1 %v4139_v28 }
 0x422   : > { %4144 = vmatprep.subr.bf16.mxu1 %v4997_v24  ;;  %v2117_v58 = vand.u32 4294901760, %v2116_v52 }
 0x424   : > { %3874 = vmatprep.mubr.f32.mxu1 %v2117_v58  ;;  %v2656_v58 = vpop.permute.xlu1 %2655 }
 0x425   : > { %3875 = vmatmul.mubr.f32.gmra.mrb[18].mxu1 %v2127_v62  ;;  %v2651_v62 = vpop.permute.xlu0 %2650 }
 0x426   : > { %3885 = vmatprep.mubr.f32.mxu1 %v4983_v0 }
 0x429   : > { %3886 = vmatmul.mubr.f32.vlgmr.msra.gmra.mrb[16].mxu1 %v5004_v37  ;;  %v2641_v8 = vpop.permute.xlu0 %2640 }
 0x42a   : > { %4146 = vmatpush3.bf16.msra.mxu1 %v4997_v24  ;;  %3888 = vmatprep.mubr.f32.mxu1 %v2113_v33  ;;  %v5069_v24 = vand.u32 4294901760, %v2668_v63 }
 0x42b   : > { %4148 = vmatprep.subr.bf16.mxu1 %v4147_v27 }
 0x42c   : > { %v5076_v15 = vsub.f32 %v2668_v63, %v5069_v24 }
 0x42d   : > { %3889 = vmatmul.mubr.f32.gmra.mrb[18].mxu1 %v5011_v60 }
 0x42e   : > { %4150 = vmatpush3.bf16.msra.mxu1 %v4147_v27  ;;  %3899 = vmatprep.mubr.f32.mxu1 %v4987_v7  ;;  %v2771_v56 = vand.u32 4294901760, %v5076_v15 }
 0x42f   : > { %4152 = vmatprep.subr.bf16.mxu1 %v4994_v14 }
 0x430   : > { %v2772_v59 = vsub.f32 %v5076_v15, %v2771_v56 }
 0x431   : > { %3900 = vmatmul.mubr.f32.vlgmr.msra.gmra.mrb[16].mxu1 %v2104_v50 }
 0x432   : > { %4154 = vmatpush3.bf16.msra.mxu1 %v4994_v14  ;;  %3902 = vmatprep.mubr.f32.mxu1 %v2114_v44  ;;  %v2773_v44 = vand.u32 4294901760, %v2772_v59 }
 0x433   : > { %4156 = vmatprep.subr.bf16.mxu1 %v4131_v43 }
 0x435   : > { %3903 = vmatmul.mubr.f32.gmra.mrb[18].mxu1 %v2124_v21 }
 0x436   : > { %4158 = vmatpush3.bf16.msra.mxu1 %v4131_v43  ;;  %3913 = vmatprep.mubr.f32.mxu1 %v2095_v9 }
 0x437   : > { %4160 = vmatprep.subr.bf16.mxu1 %v5000_v18 }
 0x439   : > { %3914 = vmatmul.mubr.f32.vlgmr.msra.gmra.mrb[16].mxu1 %v2105_v57 }
 0x43a   : > { %4162 = vmatpush3.bf16.msra.mxu1 %v5000_v18  ;;  %3916 = vmatprep.mubr.f32.mxu1 %v2115_v46 }
 0x43b   : > { %4164 = vmatprep.subr.bf16.mxu1 %v4163_v34 }
 0x43d   : > { %3917 = vmatmul.mubr.f32.gmra.mrb[18].mxu1 %v2125_v38 }
 0x43e   : > { %4166 = vmatpush3.bf16.msra.mxu1 %v4163_v34  ;;  %3927 = vmatprep.mubr.f32.mxu1 %v4983_v0 }
 0x43f   : > { %4168 = vmatprep.subr.bf16.mxu1 %v4994_v14 }
 0x441   : > { %3928 = vmatmul.mubr.f32.vlgmr.msra.gmra.mrb[16].mxu1 %v5004_v37 }
 0x442   : > { %4170 = vmatpush3.bf16.msra.mxu1 %v4994_v14  ;;  %3930 = vmatprep.mubr.f32.mxu1 %v2113_v33  ;;  %v2662_v14 = vsel %vm350_vm0, %v283_v12, 0 }
 0x443   : > { %4172 = vmatprep.subr.bf16.mxu1 %v4131_v43  ;;  %v5063_v17 = vand.u32 4294901760, %v2662_v14 }
 0x445   : > { %3931 = vmatmul.mubr.f32.gmra.mrb[18].mxu1 %v5011_v60  ;;  %v5067_v23 = vsub.f32 %v2662_v14, %v5063_v17 }
 0x446   : > { %4174 = vmatpush3.bf16.msra.mxu1 %v4131_v43  ;;  %3941 = vmatprep.mubr.f32.mxu1 %v4983_v0  ;;  %v284_v0 = vld [vmem:[%s5180_s4 + $0x10] sm:$0xff] }
 0x447   : > { %v2665_v7 = vsel %vm350_vm0, %v284_v0, 0  ;;  %v2751_v29 = vand.u32 4294901760, %v5067_v23 }
 0x448   : > { %v5050_v9 = vand.u32 4294901760, %v2665_v7 }
 0x449   : > { %3942 = vmatmul.mubr.f32.vlgmr.msra.gmra.mrb[16].mxu1 %v5004_v37  ;;  %v2752_v53 = vsub.f32 %v5067_v23, %v2751_v29 }
 0x44a   : > { %3944 = vmatprep.mubr.f32.mxu1 %v2113_v33  ;;  %v5072_v30 = vsub.f32 %v2665_v7, %v5050_v9 }
 0x44b   : > { %v2753_v21 = vand.u32 4294901760, %v2752_v53 }
 0x44c   : > { %v2761_v35 = vand.u32 4294901760, %v5072_v30 }
 0x44d   : > { %3945 = vmatmul.mubr.f32.gmra.mrb[18].mxu1 %v5011_v60 }
 0x44e   : > { %4028 = vmatprep.mubr.f32.mxu1 %v5050_v9  ;;  %v2762_v3 = vsub.f32 %v5072_v30, %v2761_v35 }
 0x450   : > { %v2763_v33 = vand.u32 4294901760, %v2762_v3 }
 0x51c   : > { %v3943_v18 = vpop.f32.mrb[16].mxu1 }
 0x51d   : > { %v2674_v20 = vand.u32 4294901760, %v3943_v18  ;;  %v2616_v26 = vpop.f32.mrb[17].mxu1 }
 0x51e   : > { %v2671_v2 = vand.u32 4294901760, %v2616_v26 }
 0x51f   : > { %v2788_v25 = vsub.f32 %v3943_v18, %v2674_v20  ;;  %v4431_v18 = vld [vmem:[%s4596_s15] sm:$0xff] }
 0x520   : > { %v5079_v37 = vpack.c.bf16 %v2674_v20, %v2671_v2  ;;  %v2781_v45 = vsub.f32 %v2616_v26, %v2671_v2  ;;  %v3946_v47 = vpop.f32.mrb[18].mxu1 }
 0x521   : > { %v2789_v48 = vand.u32 4294901760, %v2788_v25  ;;  %v2680_v50 = vand.u32 4294901760, %v3946_v47  ;;  %v2628_v51 = vpop.f32.mrb[19].mxu1 }
 0x522   : > { %v2782_v54 = vand.u32 4294901760, %v2781_v45  ;;  %v2677_v55 = vand.u32 4294901760, %v2628_v51  ;;  %4176 = vmatprep.subr.bf16.mxu0 %v5079_v37  ;;  %4223 = vmatprep.subr.bf16.mxu1 %v5079_v37  ;;  %v4191_v57 = vpack.c.bf16 %v2788_v25, %v2781_v45 }
 0x523   : > { %v2790_v60 = vsub.f32 %v2788_v25, %v2789_v48  ;;  %v2802_v1 = vsub.f32 %v3946_v47, %v2680_v50  ;;  %4178 = vmatpush3.bf16.msra.mxu0 %v5079_v37  ;;  %4225 = vmatpush3.bf16.msra.mxu1 %v5079_v37 }
 0x524   : > { %v2783_v11 = vsub.f32 %v2781_v45, %v2782_v54  ;;  %v4179_v43 = vpack.c.bf16 %v2680_v50, %v2677_v55  ;;  %v2795_v13 = vsub.f32 %v2628_v51, %v2677_v55  ;;  %v4207_v10 = vpack.c.bf16 %v2789_v48, %v2782_v54 }
 0x525   : > { %v2803_v19 = vand.u32 4294901760, %v2802_v1  ;;  %v2791_v22 = vand.u32 4294901760, %v2790_v60 }
 0x526   : > { %v2796_v4 = vand.u32 4294901760, %v2795_v13  ;;  %4180 = vmatprep.subr.bf16.mxu0 %v4179_v43  ;;  %4224 = vmatprep.subr.bf16.mxu1 %v4179_v43  ;;  %v2784_v27 = vand.u32 4294901760, %v2783_v11  ;;  %v4195_v31 = vpack.c.bf16 %v2802_v1, %v2795_v13 }
 0x527   : > { %v2804_v32 = vsub.f32 %v2802_v1, %v2803_v19  ;;  %4182 = vmatpush3.bf16.msra.mxu0 %v4179_v43  ;;  %4226 = vmatpush3.bf16.msra.mxu1 %v4179_v43 }
 0x528   : > { %v2797_v34 = vsub.f32 %v2795_v13, %v2796_v4  ;;  %v4183_v38 = vpack.c.bf16 %v2791_v22, %v2784_v27  ;;  %v4211_v40 = vpack.c.bf16 %v2803_v19, %v2796_v4 }
 0x529   : > { %v2805_v42 = vand.u32 4294901760, %v2804_v32 }
 0x52a   : > { %3956 = vmatmul.mubr.f32.vlgmr.msra.gmra.mrb[12].mxu0 %v2753_v21  ;;  %4184 = vmatprep.subr.bf16.mxu0 %v4183_v38  ;;  %v2798_v28 = vand.u32 4294901760, %v2797_v34 }
 0x52b   : > { %4186 = vmatpush3.bf16.msra.mxu0 %v4183_v38  ;;  %3958 = vmatprep.mubr.f32.mxu0 %v2763_v33 }
 0x52c   : > { %v4187_v46 = vpack.c.bf16 %v2805_v42, %v2798_v28  ;;  %4029 = vmatmul.mubr.f32.vlgmr.msra.gmra.mrb[20].mxu1 %v5069_v24 }
 0x52e   : > { %3959 = vmatmul.mubr.f32.gmra.mrb[14].mxu0 %v2773_v44  ;;  %4188 = vmatprep.subr.bf16.mxu0 %v4187_v46 }
 0x52f   : > { %4190 = vmatpush3.bf16.msra.mxu0 %v4187_v46  ;;  %3969 = vmatprep.mubr.f32.mxu0 %v5040_v5 }
 0x530   : > { %4192 = vmatprep.subr.bf16.mxu0 %v4191_v57 }
 0x532   : > { %3970 = vmatmul.mubr.f32.vlgmr.msra.gmra.mrb[12].mxu0 %v5063_v17 }
 0x533   : > { %4194 = vmatpush3.bf16.msra.mxu0 %v4191_v57  ;;  %3972 = vmatprep.mubr.f32.mxu0 %v5050_v9 }
 0x534   : > { %4196 = vmatprep.subr.bf16.mxu0 %v4195_v31 }
 0x536   : > { %3973 = vmatmul.mubr.f32.gmra.mrb[14].mxu0 %v5069_v24 }
 0x537   : > { %4198 = vmatpush3.bf16.msra.mxu0 %v4195_v31  ;;  %3983 = vmatprep.mubr.f32.mxu0 %v5043_v6 }
 0x538   : > { %4200 = vmatprep.subr.bf16.mxu0 %v5079_v37 }
 0x53a   : > { %3984 = vmatmul.mubr.f32.vlgmr.msra.gmra.mrb[12].mxu0 %v5067_v23 }
 0x53b   : > { %4202 = vmatpush3.bf16.msra.mxu0 %v5079_v37  ;;  %3986 = vmatprep.mubr.f32.mxu0 %v5072_v30 }
 0x53c   : > { %4204 = vmatprep.subr.bf16.mxu0 %v4179_v43 }
 0x53e   : > { %3987 = vmatmul.mubr.f32.gmra.mrb[14].mxu0 %v5076_v15 }
 0x53f   : > { %4206 = vmatpush3.bf16.msra.mxu0 %v4179_v43  ;;  %3997 = vmatprep.mubr.f32.mxu0 %v2741_v41  ;;  %v2646_v41 = vpop.permute.xlu1 %2645 }
 0x540   : > { %4208 = vmatprep.subr.bf16.mxu0 %v4207_v10 }
 0x542   : > { %3998 = vmatmul.mubr.f32.vlgmr.msra.gmra.mrb[12].mxu0 %v2751_v29 }
 0x543   : > { %4210 = vmatpush3.bf16.msra.mxu0 %v4207_v10  ;;  %4000 = vmatprep.mubr.f32.mxu0 %v2761_v35 }
 0x544   : > { %4212 = vmatprep.subr.bf16.mxu0 %v4211_v40 }
 0x546   : > { %4001 = vmatmul.mubr.f32.gmra.mrb[14].mxu0 %v2771_v56 }
 0x547   : > { %4214 = vmatpush3.bf16.msra.mxu0 %v4211_v40  ;;  %4011 = vmatprep.mubr.f32.mxu0 %v5040_v5 }
 0x548   : > { %4216 = vmatprep.subr.bf16.mxu0 %v5079_v37 }
 0x54a   : > { %4012 = vmatmul.mubr.f32.vlgmr.msra.gmra.mrb[12].mxu0 %v5063_v17 }
 0x54b   : > { %4218 = vmatpush3.bf16.msra.mxu0 %v5079_v37  ;;  %4014 = vmatprep.mubr.f32.mxu0 %v5050_v9 }
 0x54c   : > { %4220 = vmatprep.subr.bf16.mxu0 %v4179_v43 }
 0x54e   : > { %4015 = vmatmul.mubr.f32.gmra.mrb[14].mxu0 %v5069_v24  ;;  %v4430_v24 = vld [vmem:[%s4596_s15 + $0x8] sm:$0xff] }
 0x54f   : > { %4222 = vmatpush3.bf16.msra.mxu0 %v4179_v43  ;;  %4025 = vmatprep.mubr.f32.mxu0 %v5040_v5 }
 0x552   : > { %4026 = vmatmul.mubr.f32.vlgmr.msra.gmra.mrb[12].mxu0 %v5063_v17  ;;  %v4429_v17 = vld [vmem:[%s4596_s15 + $0x10] sm:$0xff]  ;;  %s4438_s15 = scalar_lea.vmem %s4437_s11, 1024 }
 0x553   : > { %p4440_p1 = scmp.lt.s32.totalorder %s4438_s15, %s4432_s9 }
 0x555   : > { %p4441_p2 = por %p4440_p1, %p4439_p0 }
 0x557   : > { %p4442_p3 = pnand %p4441_p2, %p4435_p13 }
 0x5ff   : > { %v4030_v49 = vpop.f32.mrb[20].mxu1 }
 0x600   : > { %v3274_v52 = vpop.f32.mrb[21].mxu1 }
 0x621   : > { %v4016_v39 = vpop.f32.mrb[14].mxu0 }
 0x622   : > { %v4257_v61 = vadd.f32 %v4016_v39, %v2656_v58  ;;  %v3181_v6 = vpop.f32.mrb[15].mxu0 }
 0x623   : > { %v4259_v0 = vadd.f32 %v3181_v6, %v2651_v62 }
 0x624   : > { %v4258_v7 = vadd.f32 %v4257_v61, %v4030_v49 }
 0x625   : > { %v4260_v5 = vadd.f32 %v4259_v0, %v3274_v52  ;;  %v4027_v9 = vpop.f32.mrb[12].mxu0 }
 0x626   : > { %v3287_v12 = vadd.f32 %v4428_v36, %v4258_v7  ;;  %v4255_v14 = vadd.f32 %v4027_v9, %v2646_v41  ;;  %v3262_v16 = vpop.f32.mrb[13].mxu0 }
 0x627   : > { %v3286_v63 = vadd.f32 %v4429_v17, %v4260_v5  ;;  %v4256_v23 = vadd.f32 %v3262_v16, %v2641_v8 }
 0x628   : > { %3291 = vst [vmem:[%s244_s18 + $0x18] sm:$0xff] %v3287_v12  ;;  %v3285_v30 = vadd.f32 %v4430_v24, %v4255_v14 }
 0x629   : > { %3290 = vst [vmem:[%s244_s18 + $0x10] sm:$0xff] %v3286_v63  ;;  %v3284_v20 = vadd.f32 %v4431_v18, %v4256_v23 }
 0x62a   : > { %3289 = vst [vmem:[%s244_s18 + $0x8] sm:$0xff] %v3285_v30 }
 0x62b   : > { %3288 = vst [vmem:[%s244_s18] sm:$0xff] %v3284_v20 }
 0x62c   : > { %4445 = shalt.err (!%p4442_p3)
}
 0x62d   : > { %s4446_s12 = scalar_lea.hbm %s5131_s29, 512  ;;  %s4450_s16 = scalar_lea.hbm %s5182_s6, 1024 }
 0x62e   : > { %p4447_p4 = scmp.ne.s32.totalorder %s5131_s29, %s4446_s12  ;;  %p4451_p9 = scmp.lt.u32.totalorder %s5131_s29, %s5182_s6 }
 0x62f   : > { %p4452_p10 = scmp.lt.u32.totalorder %s4450_s16, %s4446_s12  ;;  %p4454_p12 = scmp.lt.u32.totalorder %s4446_s12, %s5131_s29 }
 0x630   : > { %p4448_p7 = pnand %p4447_p4, %p4574_p5 }
 0x631   : > { %p4453_p11 = por %p4452_p10, %p4451_p9 }
 0x632   : > { %p4449_p8 = pneg %p4448_p7 }
 0x633   : > { %p4455_p13 = por %p4454_p12, %p4453_p11 }
 0x635   : > { %p4456_p0 = pnand %p4455_p13, %p4449_p8 }
 0x637   : > { %4459 = shalt.err (!%p4456_p0)
}
 0x638   : > { %s4499_s20 = smov 128   ;;  %s4500_s26 = smov 8  }
 0x639   : > { %4367 = dma.vmem_to_hbm [thread:$0]  (%p4574_p5), %s5124_s19, 512, %s5131_s29, %s5135_s25, %s4499_s20, %s4499_s20, %s4500_s26  }
 0x63a PF: > { %p4373_p1 = scmp.ge.s32.totalorder %s4494_s24, 2  ;;  %s3321_s28 = sand.u32 1, %s4482_s21  }
 0x63b   : > { %s3322_s9 = scalar_lea.sflag [#allocation3], %s3321_s28 }
 0x63c   : > { %p4370_p2 = pnand %p4373_p1, %p4578_p6 }
 0x63e   : > { %4477 = dma.done.wait (!%p4370_p2), %s3322_s9, 512  }
 0x63f   : > { %4479 = vsyncadd (!%p4370_p2), %s3322_s9, 4294966784  ;;  %p16_p3 = scmp.ge.s32.totalorder %s4561_s27, 4   ;;  %s5185_s21 = smov %s4486_s22 }
 0x640   : > { %s5186_s22 = smov %s4490_s23  ;;  %s5187_s23 = smov %s4572_s30 }
 0x641   : > { %s5188_s24 = smov %s4561_s27  ;;  %18 = sbr.rel (!%p16_p3) target bundleno = 3 (0x3), region = 79 }
 0x648   :  { %3327 = vsyncpa [#allocation3], 1 }
 0x649   :  { %3329 = vsyncpa [#allocation3 + $0x1], 1 }

</bundles_post_ra>
